<compile_context>
chip_gen: v7x
topology: tpu7x:2x2x1
jax: 0.10.0
libtpu: 0.0.40
codegen_flags: <defaults>
</compile_context>

<pallas_src>
import jax
import jax.numpy as jnp
from jax.experimental import pallas as pl
from jax.experimental.pallas import tpu as pltpu

PACK = 128  # lane-dense packed width for hidden/output slabs


def _round_up(x, m):
    return ((x + m - 1) // m) * m


def _ffpolicy_kernel(x_ref, w1_ref, b1_ref, w2_ref, b2_ref, w3_ref, b3_ref, out_ref):
    x = x_ref[...]
    # Layer 1 (both towers fused, 128-wide output).
    z1 = jnp.tanh(jnp.dot(x, w1_ref[...], preferred_element_type=jnp.float32)
                  + b1_ref[...])
    # Layer 2 (block-diagonal: critic h2 | actor features | zero pad).
    z2 = jnp.tanh(jnp.dot(z1, w2_ref[...], preferred_element_type=jnp.float32)
                  + b2_ref[...])
    # Layer 3: actor features pass through identity block -> cols 0:H,
    # value head (wvc + bvc) -> col H.  Single lane-dense store.
    out_ref[...] = (jnp.dot(z2, w3_ref[...], preferred_element_type=jnp.float32)
                    + b3_ref[...])


def pack_params(params, obs_dim, hidden):
    """Pack two-tower weights into three 128-lane-wide fused layers."""
    H = hidden
    assert 2 * H + 1 <= PACK, "hidden too large for single 128-lane pack"
    f32 = jnp.float32

    W1 = jnp.zeros((obs_dim, PACK), f32)
    W1 = W1.at[:, 0:H].set(params["w1c"]).at[:, H:2 * H].set(params["w1a"])
    B1 = jnp.zeros((1, PACK), f32)
    B1 = B1.at[0, 0:H].set(params["b1c"][0]).at[0, H:2 * H].set(params["b1a"][0])

    W2 = jnp.zeros((PACK, PACK), f32)
    W2 = W2.at[0:H, 0:H].set(params["w2c"]).at[H:2 * H, H:2 * H].set(params["w2a"])
    B2 = jnp.zeros((1, PACK), f32)
    B2 = B2.at[0, 0:H].set(params["b2c"][0]).at[0, H:2 * H].set(params["b2a"][0])

    W3 = jnp.zeros((PACK, PACK), f32)
    W3 = W3.at[H:2 * H, 0:H].set(jnp.eye(H, dtype=f32))   # actor feat -> cols 0:H
    W3 = W3.at[0:H, H:H + 1].set(params["wvc"])           # value      -> col H
    B3 = jnp.zeros((1, PACK), f32)
    B3 = B3.at[0, H].set(params["bvc"][0, 0])             # bvc folded into bias row

    return W1, B1, W2, B2, W3, B3


def ffpolicy_forward(inputs, states, masks, params, *, tb=None):
    """forward(inputs, states, masks) -> (value [B,1], x [B,H], states)."""
    B, obs_dim = inputs.shape
    H = params["w2a"].shape[1]
    W1, B1, W2, B2, W3, B3 = pack_params(params, obs_dim, H)

    # Batch tile: multiple of 8 sublanes, capped so (2x in + 2x out + weights)
    # stays far under the v5e 16 MiB scoped-VMEM default (and v7x 64 MiB physical).
    if tb is None:
        tb = min(512, _round_up(B, 8))
    tb = _round_up(tb, 8)
    B_pad = _round_up(B, tb)
    x = inputs if B_pad == B else jnp.pad(inputs, ((0, B_pad - B), (0, 0)))
    nb = B_pad // tb

    def weight_spec(shape):
        return pl.BlockSpec(shape, lambda i: (0, 0))   # resident across batch tiles

    flops = 2 * B_pad * (obs_dim * PACK + 2 * PACK * PACK)
    bytes_accessed = 4 * (B_pad * obs_dim + B_pad * PACK
                          + obs_dim * PACK + 2 * PACK * PACK + 3 * PACK)

    out = pl.pallas_call(
        _ffpolicy_kernel,
        out_shape=jax.ShapeDtypeStruct((B_pad, PACK), jnp.float32),
        grid=(nb,),
        in_specs=[
            pl.BlockSpec((tb, obs_dim), lambda i: (i, 0)),   # streamed batch tile
            weight_spec((obs_dim, PACK)), weight_spec((1, PACK)),
            weight_spec((PACK, PACK)),    weight_spec((1, PACK)),
            weight_spec((PACK, PACK)),    weight_spec((1, PACK)),
        ],
        out_specs=pl.BlockSpec((tb, PACK), lambda i: (i, 0)),
        compiler_params=pltpu.CompilerParams(
            dimension_semantics=("parallel",)),              # v7x: 2 TCs split batch
        cost_estimate=pl.CostEstimate(
            flops=int(flops),
            transcendentals=int(2 * B_pad * PACK),
            bytes_accessed=int(bytes_accessed)),
    )(x, W1, B1, W2, B2, W3, B3)

    feat = out[:B, 0:H]          # actor features for the (external) dist head
    value = out[:B, H:H + 1]     # critic value
    # Feed-forward policy: states pass through untouched; masks unused.
    return value, feat, states


def init_params(key, obs_dim, hidden):
    ks = jax.random.split(key, 5)

    def lin(k, fan_in, fan_out):
        w = jax.random.normal(k, (fan_in, fan_out), jnp.float32) / jnp.sqrt(fan_in)
        b = jnp.zeros((1, fan_out), jnp.float32)
        return w, b

    w1c, b1c = lin(ks[0], obs_dim, hidden)
    w2c, b2c = lin(ks[1], hidden, hidden)
    wvc, bvc = lin(ks[2], hidden, 1)
    w1a, b1a = lin(ks[3], obs_dim, hidden)
    w2a, b2a = lin(ks[4], hidden, hidden)
    return dict(w1c=w1c, b1c=b1c, w2c=w2c, b2c=b2c, wvc=wvc, bvc=bvc,
                w1a=w1a, b1a=b1a, w2a=w2a, b2a=b2a)


if __name__ == "__main__":
    key = jax.random.PRNGKey(0)
    k_in, k_p = jax.random.split(key)

    B, OBS, H = 20, 16, 32                    # B not a multiple of 8 -> exercises padding
    inputs = jax.random.normal(k_in, (B, OBS), jnp.float32)
    states = jnp.zeros((B, H), jnp.float32)   # unused by a feed-forward policy
    masks = jnp.ones((B, 1), jnp.float32)     # unused by a feed-forward policy

    params = init_params(k_p, OBS, H)

    # tb=8 -> grid=(3,) so the batch-tiled pipeline path is exercised.
    value, x, states_out = ffpolicy_forward(inputs, states, masks, params, tb=8)
    jax.block_until_ready((value, x, states_out))

    # Sanity check against plain-JAX reference (unpacked two-tower MLP).
    h = jnp.tanh(inputs @ params["w1c"] + params["b1c"])
    h = jnp.tanh(h @ params["w2c"] + params["b2c"])
    v_ref = h @ params["wvc"] + params["bvc"]
    a = jnp.tanh(inputs @ params["w1a"] + params["b1a"])
    x_ref = jnp.tanh(a @ params["w2a"] + params["b2a"])

    assert value.shape == (B, 1) and x.shape == (B, H)
    assert jnp.allclose(value, v_ref, atol=1e-4, rtol=1e-4), "value mismatch"
    assert jnp.allclose(x, x_ref, atol=1e-4, rtol=1e-4), "feature mismatch"
    assert jnp.array_equal(states_out, states)

    print("KERNEL_OK")
</pallas_src>

<mosaic_0001>
module attributes {stable_mosaic.version = 11 : i64} {
  func.func @_ffpolicy_kernel(%arg0: i32, %arg1: memref<8x16xf32, #tpu.memory_space<vmem>>, %arg2: memref<16x128xf32, #tpu.memory_space<vmem>>, %arg3: memref<1x128xf32, #tpu.memory_space<vmem>>, %arg4: memref<128x128xf32, #tpu.memory_space<vmem>>, %arg5: memref<1x128xf32, #tpu.memory_space<vmem>>, %arg6: memref<128x128xf32, #tpu.memory_space<vmem>>, %arg7: memref<1x128xf32, #tpu.memory_space<vmem>>, %arg8: memref<8x128xf32, #tpu.memory_space<vmem>>) attributes {dimension_semantics = [#tpu.dimension_semantics<parallel>], iteration_bounds = array<i64: 3>, scalar_prefetch = 0 : i64, scratch_operands = 0 : i64, tpu.core_type = #tpu.core_type<tc>, window_params = [{transform_indices = @transform_0, window_bounds = array<i64: 8, 16>}, {pipeline_mode = #tpu.pipeline_mode<synchronous>, transform_indices = @transform_1, window_bounds = array<i64: 16, 128>}, {pipeline_mode = #tpu.pipeline_mode<synchronous>, transform_indices = @transform_2, window_bounds = array<i64: 1, 128>}, {pipeline_mode = #tpu.pipeline_mode<synchronous>, transform_indices = @transform_3, window_bounds = array<i64: 128, 128>}, {pipeline_mode = #tpu.pipeline_mode<synchronous>, transform_indices = @transform_4, window_bounds = array<i64: 1, 128>}, {pipeline_mode = #tpu.pipeline_mode<synchronous>, transform_indices = @transform_5, window_bounds = array<i64: 128, 128>}, {pipeline_mode = #tpu.pipeline_mode<synchronous>, transform_indices = @transform_6, window_bounds = array<i64: 1, 128>}, {transform_indices = @transform_7, window_bounds = array<i64: 8, 128>}]} {
    %c0 = arith.constant 0 : index
    %c0_0 = arith.constant 0 : index
    %0 = vector.load %arg1[%c0, %c0_0] : memref<8x16xf32, #tpu.memory_space<vmem>>, vector<8x16xf32>
    %c0_1 = arith.constant 0 : index
    %c0_2 = arith.constant 0 : index
    %1 = vector.load %arg2[%c0_1, %c0_2] : memref<16x128xf32, #tpu.memory_space<vmem>>, vector<16x128xf32>
    %cst = arith.constant dense<0.000000e+00> : vector<8x128xf32>
    %2 = tpu.matmul %0, %1, %cst {dimension_numbers = #tpu.dot_dimension_numbers<[1], [0], [0], [1], [0, 0, 1, 1], [], []>} : vector<8x16xf32>, vector<16x128xf32>, vector<8x128xf32> -> vector<8x128xf32>
    %c0_3 = arith.constant 0 : index
    %c0_4 = arith.constant 0 : index
    %3 = vector.load %arg3[%c0_3, %c0_4] : memref<1x128xf32, #tpu.memory_space<vmem>>, vector<1x128xf32>
    %4 = vector.broadcast %3 : vector<1x128xf32> to vector<8x128xf32>
    %5 = arith.addf %2, %4 : vector<8x128xf32>
    %6 = math.tanh %5 : vector<8x128xf32>
    %c0_5 = arith.constant 0 : index
    %c0_6 = arith.constant 0 : index
    %7 = vector.load %arg4[%c0_5, %c0_6] : memref<128x128xf32, #tpu.memory_space<vmem>>, vector<128x128xf32>
    %cst_7 = arith.constant dense<0.000000e+00> : vector<8x128xf32>
    %8 = tpu.matmul %6, %7, %cst_7 {dimension_numbers = #tpu.dot_dimension_numbers<[1], [0], [0], [1], [0, 0, 1, 1], [], []>} : vector<8x128xf32>, vector<128x128xf32>, vector<8x128xf32> -> vector<8x128xf32>
    %c0_8 = arith.constant 0 : index
    %c0_9 = arith.constant 0 : index
    %9 = vector.load %arg5[%c0_8, %c0_9] : memref<1x128xf32, #tpu.memory_space<vmem>>, vector<1x128xf32>
    %10 = vector.broadcast %9 : vector<1x128xf32> to vector<8x128xf32>
    %11 = arith.addf %8, %10 : vector<8x128xf32>
    %12 = math.tanh %11 : vector<8x128xf32>
    %c0_10 = arith.constant 0 : index
    %c0_11 = arith.constant 0 : index
    %13 = vector.load %arg6[%c0_10, %c0_11] : memref<128x128xf32, #tpu.memory_space<vmem>>, vector<128x128xf32>
    %cst_12 = arith.constant dense<0.000000e+00> : vector<8x128xf32>
    %14 = tpu.matmul %12, %13, %cst_12 {dimension_numbers = #tpu.dot_dimension_numbers<[1], [0], [0], [1], [0, 0, 1, 1], [], []>} : vector<8x128xf32>, vector<128x128xf32>, vector<8x128xf32> -> vector<8x128xf32>
    %c0_13 = arith.constant 0 : index
    %c0_14 = arith.constant 0 : index
    %15 = vector.load %arg7[%c0_13, %c0_14] : memref<1x128xf32, #tpu.memory_space<vmem>>, vector<1x128xf32>
    %16 = vector.broadcast %15 : vector<1x128xf32> to vector<8x128xf32>
    %17 = arith.addf %14, %16 : vector<8x128xf32>
    %c0_15 = arith.constant 0 : index
    %c0_16 = arith.constant 0 : index
    %18 = vector.load %arg8[%c0_15, %c0_16] : memref<8x128xf32, #tpu.memory_space<vmem>>, vector<8x128xf32>
    tpu.vector_store %arg8[%c0_15, %c0_16], %17 {strides = array<i32>} : memref<8x128xf32, #tpu.memory_space<vmem>>, vector<8x128xf32>,
    return
  }
  func.func @transform_0(%arg0: i32) -> (i32, i32) {
    %c0_i32 = arith.constant 0 : i32
    %c0_i32_0 = arith.constant 0 : i32
    return %arg0, %c0_i32 : i32, i32
  }
  func.func @transform_1(%arg0: i32) -> (i32, i32) {
    %c0_i32 = arith.constant 0 : i32
    %c0_i32_0 = arith.constant 0 : i32
    %c0_i32_1 = arith.constant 0 : i32
    return %c0_i32, %c0_i32_0 : i32, i32
  }
  func.func @transform_2(%arg0: i32) -> (i32, i32) {
    %c0_i32 = arith.constant 0 : i32
    %c0_i32_0 = arith.constant 0 : i32
    %c0_i32_1 = arith.constant 0 : i32
    return %c0_i32, %c0_i32_0 : i32, i32
  }
  func.func @transform_3(%arg0: i32) -> (i32, i32) {
    %c0_i32 = arith.constant 0 : i32
    %c0_i32_0 = arith.constant 0 : i32
    %c0_i32_1 = arith.constant 0 : i32
    return %c0_i32, %c0_i32_0 : i32, i32
  }
  func.func @transform_4(%arg0: i32) -> (i32, i32) {
    %c0_i32 = arith.constant 0 : i32
    %c0_i32_0 = arith.constant 0 : i32
    %c0_i32_1 = arith.constant 0 : i32
    return %c0_i32, %c0_i32_0 : i32, i32
  }
  func.func @transform_5(%arg0: i32) -> (i32, i32) {
    %c0_i32 = arith.constant 0 : i32
    %c0_i32_0 = arith.constant 0 : i32
    %c0_i32_1 = arith.constant 0 : i32
    return %c0_i32, %c0_i32_0 : i32, i32
  }
  func.func @transform_6(%arg0: i32) -> (i32, i32) {
    %c0_i32 = arith.constant 0 : i32
    %c0_i32_0 = arith.constant 0 : i32
    %c0_i32_1 = arith.constant 0 : i32
    return %c0_i32, %c0_i32_0 : i32, i32
  }
  func.func @transform_7(%arg0: i32) -> (i32, i32) {
    %c0_i32 = arith.constant 0 : i32
    %c0_i32_0 = arith.constant 0 : i32
    return %arg0, %c0_i32 : i32, i32
  }
}

</mosaic_0001>

<bundles_post_ra>
// kernel: tpu_custom_call.1
= control target key start
LH: loop header
LB: loop body
LE: loop exit
PB: predicated region body
PF: predicated region fallthrough
CT: control target
= control target key end

     0   :  { %12 = vsyncpa [#allocation3], 0  ;;  %s1307_s0 = inlined_call_operand.vmem [shape: f32[24,16], index: 0, kind: input, shape index: {}]   ;;  %s1308_s1 = inlined_call_operand.vmem [shape: f32[16,128], index: 1, kind: input, shape index: {}]   ;;  %s1309_s2 = inlined_call_operand.vmem [shape: f32[1,128], index: 2, kind: input, shape index: {}]   ;;  %s1310_s3 = inlined_call_operand.hbm [shape: f32[128,128], index: 3, kind: input, shape index: {}]   ;;  %s1311_s4 = inlined_call_operand.vmem [shape: f32[1,128], index: 4, kind: input, shape index: {}]   ;;  %s1312_s5 = inlined_call_operand.hbm [shape: f32[128,128], index: 5, kind: input, shape index: {}]   ;;  %s1313_s6 = inlined_call_operand.vmem [shape: f32[1,128], index: 6, kind: input, shape index: {}]   ;;  %s1314_s7 = inlined_call_operand.hbm [shape: f32[24,128], index: 7, kind: output, shape index: {}]  }
   0x1   :  { %13 = vsyncpa [#allocation6], 0 }
   0x2   :  { %14 = vsyncpa [#allocation4], 0 }
   0x3   :  { %16 = vsyncpa [#allocation4 + $0x1], 0  ;;  %s1100_s24 = smov 0   ;;  %s1102_s25 = smov 0  }
   0x4   :  { %s1104_s26 = smov 0   ;;  %s1106_s27 = smov 0  }
   0x5 LB: > { %s1121_s28 = sadd.s32 4294967295, %s1050_s27   ;;  %s672_s29 = sadd.s32 4294967294, %s1050_s27   ;;  %s1050_s27 = sphi %s1106_s27, %s1334_s27   ;;  %s1046_s26 = sphi %s1104_s26, %s1333_s26   ;;  %s1042_s25 = sphi %s1102_s25, %s1332_s25   ;;  %s1038_s24 = sphi %s1100_s24, %s1331_s24  }
   0x6   : > { %s1125_s30 = sadd.s32 1, %s1050_s27   ;;  %s181_s8 = sadd.s32 1, %s1046_s26 }
   0x7   : > { %s178_s9 = ssub.s32 %s1050_s27, %s1125_s30  ;;  %p191_p0 = scmp.ne.s32.totalorder %s1046_s26, %s1042_s25 }
   0x8   : > { %p179_p1 = scmp.eq.s32.totalorder %s178_s9, 0  ;;  %p192_p2 = scmp.eq.s32.totalorder %s1121_s28, 2 }
   0x9   : > { %p197_p3 = scmp.ne.s32.totalorder %s1042_s25, %s1038_s24  ;;  %p198_p4 = scmp.eq.s32.totalorder %s672_s29, 2 }
   0xa   : > { %s1136_s10 = scalar_select %p179_p1, %s1046_s26, %s181_s8  }
   0xb   : > { %p1138_p5 = por %p192_p2, %p191_p0  ;;  %p1142_p6 = por %p198_p4, %p197_p3 }
   0xc   : > { %1318 = sst [smem:[#allocation11_spill]] %s1136_s10  ;;  %p673_p7 = scmp.ge.s32.totalorder %s1050_s27, 1 }
   0xd   : > { %s1319_s11 = scalar_select %p1138_p5, 1, 0 }
   0xe   : > { %s1320_s12 = scalar_select %p1142_p6, 1, 0 }
   0xf   : > { %p205_p8 = scmp.lt.s32.totalorder %s1050_s27, 4  ;;  %p1315_p9 = scmp.eq.s32.totalorder %s1121_s28, 0 }
  0x10   : > { %s1052_s14 = smov [#allocation2]   ;;  %s1053_s17 = smov [#allocation5]  }
  0x11   : > { %p1149_p10 = pnand %p673_p7, %p205_p8  ;;  %s223_s15 = sshll.u32 %s1052_s14, 4  ;;  %s224_s15 = int_to_ptr.vmem [resolvable:$true] %s223_s15 }
  0x12   : > { %s239_s18 = sshll.u32 %s1053_s17, 4  ;;  %s924_s21 = scalar_lea.hbm %s1310_s3, 2048  ;;  %s1161_s18 = int_to_ptr.vmem [resolvable:$true] %s239_s18 }
  0x13   : > { %s1321_s13 = scalar_select %p1149_p10, 1, 0 }
  0x14   : > { %p865_p11 = pneg %p1149_p10  ;;  %p925_p13 = scmp.ne.s32.totalorder %s1310_s3, %s924_s21 }
  0x15   : > { %p931_p3 = scmp.lt.u32.totalorder %s924_s21, %s1310_s3 }
  0x16   : > { %p1157_p12 = pnand %p1315_p9, %p865_p11 }
  0x18   : > { %p926_p0 = pneg %p1157_p12 }
  0x1a   : > { %p927_p1 = pnand %p926_p0, %p925_p13 }
  0x1c   : > { %p928_p2 = pneg %p927_p1 }
  0x1e   : > { %p933_p4 = pnand %p931_p3, %p928_p2 }
  0x20   : > { %936 = shalt.err (!%p933_p4)
}
  0x21   : > { %s937_s9 = scalar_lea.vmem %s224_s15, 2048  ;;  %p945_p9 = scmp.lt.s32.totalorder %s224_s15, %s224_s15 }
  0x22   : > { %p938_p7 = scmp.ne.s32.totalorder %s224_s15, %s937_s9  ;;  %p946_p6 = scmp.lt.s32.totalorder %s937_s9, %s937_s9 }
  0x24   : > { %p940_p8 = pnand %p938_p7, %p926_p0  ;;  %p947_p5 = por %p946_p6, %p945_p9 }
  0x26   : > { %p941_p11 = pneg %p940_p8 }
  0x28   : > { %p948_p10 = pnand %p947_p5, %p941_p11 }
  0x2a   : > { %951 = shalt.err (!%p948_p10)
}
  0x2b   : > { %s1054_s14 = smov 128   ;;  %s1055_s17 = smov 8  }
  0x2c   : > { %868 = dma.hbm_to_vmem [thread:$0]  (!%p1157_p12), %s1310_s3, 2048, %s224_s15, [#allocation3], %s1054_s14, %s1054_s14, %s1055_s17  }
  0x2d   : > { %s952_s23 = scalar_lea.hbm %s1312_s5, 2048 }
  0x2e   : > { %p953_p13 = scmp.ne.s32.totalorder %s1312_s5, %s952_s23  ;;  %p959_p9 = scmp.lt.u32.totalorder %s952_s23, %s1312_s5 }
  0x30   : > { %p955_p5 = pnand %p953_p13, %p926_p0 }
  0x32   : > { %p956_p6 = pneg %p955_p5 }
  0x34   : > { %p961_p10 = pnand %p959_p9, %p956_p6 }
  0x36   : > { %964 = shalt.err (!%p961_p10)
}
  0x37   : > { %s965_s15 = scalar_lea.vmem %s1161_s18, 2048  ;;  %p973_p4 = scmp.lt.s32.totalorder %s1161_s18, %s1161_s18 }
  0x38   : > { %p966_p1 = scmp.ne.s32.totalorder %s1161_s18, %s965_s15  ;;  %p974_p7 = scmp.lt.s32.totalorder %s965_s15, %s965_s15 }
  0x3a   : > { %p968_p2 = pnand %p966_p1, %p926_p0  ;;  %p975_p8 = por %p974_p7, %p973_p4 }
  0x3c   : > { %p969_p3 = pneg %p968_p2 }
  0x3e   : > { %p976_p11 = pnand %p975_p8, %p969_p3 }
  0x40   : > { %979 = shalt.err (!%p976_p11)
}
  0x41   : > { %871 = dma.hbm_to_vmem [thread:$0]  (!%p1157_p12), %s1312_s5, 2048, %s1161_s18, [#allocation6], %s1054_s14, %s1054_s14, %s1055_s17  }
  0x42   : > { %p1323_p13 = scmp.ne.s32.totalorder %s1321_s13, 0 }
  0x43   : > { %p1324_p5 = scmp.eq.s32.totalorder (!%p1323_p13), %s1121_s28, 0 }
  0x44   : > { %265 = sbr.rel (%p1323_p13) target bundleno = 765 (0x2fd), region = 48 }
  0x4b   : > { %1025 = dma.done.wait (%p1324_p5), [#allocation3], 2048   ;;  %p1325_p0 = pmov %p1324_p5 }
  0x4d   : > { %1027 = vsyncadd (%p1325_p0), [#allocation3], 4294965248  ;;  %p1326_p6 = pmov %p1325_p0 }
  0x4e   : > { %p1327_p9 = pmov %p1325_p0 }
  0x4f   : > { %1029 = dma.done.wait (%p1326_p6), [#allocation6], 2048  }
  0x50   : > { %1031 = vsyncadd (%p1327_p9), [#allocation6], 4294965248  ;;  %p300_p10 = scmp.lt.s32.totalorder %s1121_s28, 2  ;;  %v1056_v0 = vmov 0.0|0.0   ;;  %vm1057_vm0 = vmmov 0   ;;  %v1058_v1 = vmov 0.0  }
  0x51   : > { %804 = vmatprep.subr.bf16.mxu0 %v1056_v0  ;;  %731 = vmatprep.mubr.msk.f32.mxu0 %vm1057_vm0, %v1058_v1  ;;  %v305_v2 = vld [vmem:[%s1308_s1] sm:$0xff]  ;;  %v306_v3 = vld [vmem:[%s1308_s1 + $0x8] sm:$0xff]  ;;  %v391_v7 = vld [vmem:[#allocation2 + $0x10] sm:$0xff]  ;;  %vm314_vm1 = vcmask 130048   ;;  %s297_s10 = sand.u32 1, %s1042_s25   ;;  %s687_s18 = sshll.u32 %s1121_s28, 7 }
  0x52   : > { %s301_s13 = scalar_select %p300_p10, %s1121_s28, 2  ;;  %807 = vmatprep.subr.bf16.mxu1 %v1056_v0  ;;  %766 = vmatprep.mubr.msk.f32.mxu1 %vm1057_vm0, %v1058_v1  ;;  %v805_v4 = vpack.c.bf16 %v306_v3, %v305_v2  ;;  %v389_v5 = vld [vmem:[#allocation2] sm:$0xff]  ;;  %v390_v6 = vld [vmem:[#allocation2 + $0x8] sm:$0xff]  ;;  %v392_v9 = vld [vmem:[#allocation2 + $0x18] sm:$0xff] }
  0x53   : > { %v808_v8 = vpack.c.bf16 %v390_v6, %v389_v5  ;;  %v811_v11 = vpack.c.bf16 %v392_v9, %v391_v7  ;;  %v393_v12 = vld [vmem:[#allocation2 + $0x20] sm:$0xff]  ;;  %v394_v13 = vld [vmem:[#allocation2 + $0x28] sm:$0xff]  ;;  %v395_v15 = vld [vmem:[#allocation2 + $0x30] sm:$0xff]  ;;  %s680_s19 = sshll.u32 %s297_s10, 3  ;;  %s1265_s22 = scalar_lea.hbm %s1314_s7, %s687_s18 }
  0x54   : > { %s681_s16 = sshll.u32 %s301_s13, 3  ;;  %806 = vmatpush3.bf16.msra.mxu0 %v805_v4  ;;  %v814_v14 = vpack.c.bf16 %v394_v13, %v393_v12  ;;  %v396_v16 = vld [vmem:[#allocation2 + $0x38] sm:$0xff]  ;;  %v397_v18 = vld [vmem:[#allocation2 + $0x40] sm:$0xff]  ;;  %v398_v19 = vld [vmem:[#allocation2 + $0x48] sm:$0xff]  ;;  %s299_s14 = scalar_lea.vmem [#allocation7], %s680_s19 }
  0x55   : > { %s303_s23 = scalar_lea.vmem %s1307_s0, %s681_s16  ;;  %809 = vmatpush3.bf16.msra.mxu1 %v808_v8  ;;  %831 = vmatprep.subr.bf16.mxu0 %v1056_v0  ;;  %v817_v17 = vpack.c.bf16 %v396_v16, %v395_v15  ;;  %v820_v20 = vpack.c.bf16 %v398_v19, %v397_v18  ;;  %v399_v21 = vld [vmem:[#allocation2 + $0x50] sm:$0xff]  ;;  %v400_v22 = vld [vmem:[#allocation2 + $0x58] sm:$0xff]  ;;  %v401_v24 = vld [vmem:[#allocation2 + $0x60] sm:$0xff]  ;;  %s591_s17 = sshll.u32 %s299_s14, 4  ;;  %s1267_s17 = int_to_ptr.vmem [resolvable:$true] %s591_s17 }
  0x56   : > { %v304_v10 = vld [vmem:[%s303_s23] sm:$0xff]  ;;  %810 = vmatprep.subr.bf16.mxu1 %v1056_v0  ;;  %v823_v23 = vpack.c.bf16 %v400_v22, %v399_v21  ;;  %v402_v25 = vld [vmem:[#allocation2 + $0x68] sm:$0xff]  ;;  %v403_v27 = vld [vmem:[#allocation2 + $0x70] sm:$0xff]  ;;  %s578_s23 = scalar_lea.sflag [#allocation4], %s297_s10  ;;  %s980_s29 = scalar_lea.vmem %s1267_s17, 128 }
  0x57   : > { %732 = vmatmul.mubr.msk.f32.vlgmr.msra.gmra.mrb[0].mxu0 %vm314_vm1, %v304_v10  ;;  %v826_v26 = vpack.c.bf16 %v402_v25, %v401_v24  ;;  %v404_v28 = vld [vmem:[#allocation2 + $0x78] sm:$0xff]  ;;  %v483_v30 = vld [vmem:[#allocation5] sm:$0xff]  ;;  %v484_v31 = vld [vmem:[#allocation5 + $0x8] sm:$0xff]  ;;  %p981_p12 = scmp.ne.s32.totalorder %s1267_s17, %s980_s29  ;;  %p1328_p1 = scmp.ne.s32.totalorder %s1319_s11, 0 }
  0x58   : > { %801 = vmatprep.mubr.msk.f32.mxu0 %vm1057_vm0, %v1058_v1  ;;  %v829_v29 = vpack.c.bf16 %v404_v28, %v403_v27  ;;  %v485_v32 = vld [vmem:[#allocation5 + $0x10] sm:$0xff]  ;;  %v832_v33 = vpack.c.bf16 %v484_v31, %v483_v30  ;;  %v486_v34 = vld [vmem:[#allocation5 + $0x18] sm:$0xff]  ;;  %v487_v36 = vld [vmem:[#allocation5 + $0x20] sm:$0xff]  ;;  %s1059_s28 = smov [#allocation7]  }
  0x59   : > { %812 = vmatpush3.bf16.msra.mxu1 %v811_v11  ;;  %v835_v35 = vpack.c.bf16 %v486_v34, %v485_v32  ;;  %v488_v37 = vld [vmem:[#allocation5 + $0x28] sm:$0xff]  ;;  %v489_v39 = vld [vmem:[#allocation5 + $0x30] sm:$0xff]  ;;  %v490_v40 = vld [vmem:[#allocation5 + $0x38] sm:$0xff]  ;;  %p982_p2 = pnand %p981_p12, %p1328_p1  ;;  %s984_s8 = sshll.u32 %s1059_s28, 4  ;;  %s985_s8 = int_to_ptr.vmem [resolvable:$false] %s984_s8 }
  0x5a   : > { %813 = vmatprep.subr.bf16.mxu1 %v1056_v0  ;;  %833 = vmatpush3.bf16.msra.mxu0 %v832_v33  ;;  %v838_v38 = vpack.c.bf16 %v488_v37, %v487_v36  ;;  %v841_v41 = vpack.c.bf16 %v490_v40, %v489_v39  ;;  %v491_v42 = vld [vmem:[#allocation5 + $0x40] sm:$0xff]  ;;  %v492_v43 = vld [vmem:[#allocation5 + $0x48] sm:$0xff]  ;;  %v493_v50 = vld [vmem:[#allocation5 + $0x50] sm:$0xff]  ;;  %s986_s9 = scalar_lea.vmem %s985_s8, 256  ;;  %p987_p4 = scmp.lt.s32.totalorder %s1267_s17, %s985_s8 }
  0x5b   : > { %834 = vmatprep.subr.bf16.mxu0 %v1056_v0  ;;  %v844_v44 = vpack.c.bf16 %v492_v43, %v491_v42  ;;  %v682_v45 = vld [vmem:[%s1309_s2] ss:$0 sm:$0xff]  ;;  %v494_v51 = vld [vmem:[#allocation5 + $0x58] sm:$0xff]  ;;  %v496_v54 = vld [vmem:[#allocation5 + $0x68] sm:$0xff]  ;;  %p983_p3 = pneg %p982_p2  ;;  %p988_p7 = scmp.lt.s32.totalorder %s986_s9, %s980_s29 }
  0x5c   : > { %v847_v52 = vpack.c.bf16 %v494_v51, %v493_v50  ;;  %v495_v53 = vld [vmem:[#allocation5 + $0x60] sm:$0xff]  ;;  %v497_v56 = vld [vmem:[#allocation5 + $0x70] sm:$0xff]  ;;  %v498_v57 = vld [vmem:[#allocation5 + $0x78] sm:$0xff] }
  0x5d   : > { %815 = vmatpush3.bf16.msra.mxu1 %v814_v14  ;;  %v850_v55 = vpack.c.bf16 %v496_v54, %v495_v53  ;;  %v853_v58 = vpack.c.bf16 %v498_v57, %v497_v56  ;;  %v684_v59 = vld [vmem:[%s1311_s4] ss:$0 sm:$0xff]  ;;  %p989_p8 = por %p988_p7, %p987_p4 }
  0x5e   : > { %816 = vmatprep.subr.bf16.mxu1 %v1056_v0  ;;  %836 = vmatpush3.bf16.msra.mxu0 %v835_v35  ;;  %v685_v1 = vld [vmem:[%s1313_s6] ss:$0 sm:$0xff] }
  0x5f   : > { %837 = vmatprep.subr.bf16.mxu0 %v1056_v0  ;;  %p990_p11 = pnand %p989_p8, %p983_p3 }
  0x61   : > { %818 = vmatpush3.bf16.msra.mxu1 %v817_v17 }
  0x62   : > { %819 = vmatprep.subr.bf16.mxu1 %v1056_v0  ;;  %839 = vmatpush3.bf16.msra.mxu0 %v838_v38 }
  0x63   : > { %840 = vmatprep.subr.bf16.mxu0 %v1056_v0 }
  0x65   : > { %821 = vmatpush3.bf16.msra.mxu1 %v820_v20 }
  0x66   : > { %822 = vmatprep.subr.bf16.mxu1 %v1056_v0  ;;  %842 = vmatpush3.bf16.msra.mxu0 %v841_v41 }
  0x67   : > { %843 = vmatprep.subr.bf16.mxu0 %v1056_v0 }
  0x69   : > { %824 = vmatpush3.bf16.msra.mxu1 %v823_v23 }
  0x6a   : > { %825 = vmatprep.subr.bf16.mxu1 %v1056_v0  ;;  %845 = vmatpush3.bf16.msra.mxu0 %v844_v44 }
  0x6b   : > { %846 = vmatprep.subr.bf16.mxu0 %v1056_v0 }
  0x6d   : > { %827 = vmatpush3.bf16.msra.mxu1 %v826_v26 }
  0x6e   : > { %828 = vmatprep.subr.bf16.mxu1 %v1056_v0  ;;  %848 = vmatpush3.bf16.msra.mxu0 %v847_v52 }
  0x6f   : > { %849 = vmatprep.subr.bf16.mxu0 %v1056_v0 }
  0x71   : > { %830 = vmatpush3.bf16.msra.mxu1 %v829_v29 }
  0x72   : > { %851 = vmatpush3.bf16.msra.mxu0 %v850_v55 }
  0x73   : > { %852 = vmatprep.subr.bf16.mxu0 %v1056_v0 }
  0x76   : > { %854 = vmatpush3.bf16.msra.mxu0 %v853_v58 }
 0x12a   : > { %v384_v46 = vpop.f32.mrb[0].mxu0 }
 0x12b   : > { %v385_v47 = vadd.f32 %v682_v45, %v384_v46  ;;  %v733_v48 = vpop.f32.mrb[1].mxu0 }
 0x12d   : > { %920 = vtanh.f32 %v385_v47 }
 0x137   : > { %v921_v49 = vpop.eup %920 }
 0x138   : > { %767 = vmatmul.mubr.f32.vlgmr.msra.gmra.mrb[0].mxu1 %v921_v49 }
 0x20b   : > { %v478_v60 = vpop.f32.mrb[0].mxu1 }
 0x20c   : > { %v479_v61 = vadd.f32 %v684_v59, %v478_v60  ;;  %v768_v62 = vpop.f32.mrb[1].mxu1 }
 0x20e   : > { %922 = vtanh.f32 %v479_v61 }
 0x218   : > { %v923_v63 = vpop.eup %922 }
 0x219   : > { %802 = vmatmul.mubr.f32.vlgmr.msra.gmra.mrb[2].mxu0 %v923_v63 }
 0x2ec   : > { %v572_v0 = vpop.f32.mrb[2].mxu0 }
 0x2ed   : > { %v573_v2 = vadd.f32 %v685_v1, %v572_v0  ;;  %v803_v3 = vpop.f32.mrb[3].mxu0 }
 0x2ef   : > { %576 = vst [vmem:[%s299_s14] sm:$0xff] %v573_v2 }
 0x2f0   : > { %993 = shalt.err (!%p990_p11)
}
 0x2f1   : > { %s994_s15 = scalar_lea.hbm %s1265_s22, 128  ;;  %s998_s13 = scalar_lea.hbm %s1314_s7, 384 }
 0x2f2   : > { %p995_p13 = scmp.ne.s32.totalorder %s1265_s22, %s994_s15  ;;  %p999_p6 = scmp.lt.u32.totalorder %s1265_s22, %s1314_s7 }
 0x2f3   : > { %p1000_p9 = scmp.lt.u32.totalorder %s998_s13, %s994_s15  ;;  %p1002_p12 = scmp.lt.u32.totalorder %s994_s15, %s1265_s22 }
 0x2f4   : > { %p996_p5 = pnand %p995_p13, %p1328_p1 }
 0x2f5   : > { %p1001_p10 = por %p1000_p9, %p999_p6 }
 0x2f6   : > { %p997_p0 = pneg %p996_p5 }
 0x2f7   : > { %p1003_p2 = por %p1002_p12, %p1001_p10 }
 0x2f9   : > { %p1004_p3 = pnand %p1003_p2, %p997_p0 }
 0x2fb   : > { %1007 = shalt.err (!%p1004_p3)
}
 0x2fc   : > { %863 = dma.vmem_to_hbm [thread:$0]  (%p1328_p1), %s1267_s17, 128, %s1265_s22, %s578_s23  }
 0x2fd PF: > { %p880_p4 = scmp.ge.s32.totalorder %s1050_s27, 2  ;;  %s603_s14 = sand.u32 1, %s1038_s24  }
 0x2fe   : > { %p1329_p7 = scmp.ne.s32.totalorder %s1320_s12, 0  ;;  %s604_s20 = scalar_lea.sflag [#allocation4], %s603_s14 }
 0x300   : > { %p873_p8 = pnand %p880_p4, %p1329_p7 }
 0x302   : > { %1033 = dma.done.wait (!%p873_p8), %s604_s20, 128  }
 0x303   : > { %1035 = vsyncadd (!%p873_p8), %s604_s20, 4294967168  ;;  %s1330_s21 = sld [smem:[#allocation11_spill]]  ;;  %p19_p11 = scmp.ge.s32.totalorder %s1125_s30, 5  }
 0x304   : > { %s1331_s24 = smov %s1042_s25  ;;  %s1332_s25 = smov %s1046_s26 }
 0x305   : > { %s1334_s27 = smov %s1125_s30  ;;  %21 = sbr.rel (!%p19_p11) target bundleno = 5 (0x5), region = 92 }
 0x309   : > { %s1333_s26 = smov %s1330_s21 }
 0x30c   :  { %609 = vsyncpa [#allocation3], 1 }
 0x30d   :  { %611 = vsyncpa [#allocation3 + $0x1], 1 }
 0x30e   :  { %612 = vsyncpa [#allocation6], 1 }
 0x30f   :  { %613 = vsyncpa [#allocation4], 1 }
 0x310   :  { %615 = vsyncpa [#allocation4 + $0x1], 1 }

</bundles_post_ra>
